<compile_context>
chip_gen: v7x
topology: tpu7x:2x2x1
jax: 0.10.0
libtpu: 0.0.40
codegen_flags: <defaults>
</compile_context>

<pallas_src>
import jax
import jax.numpy as jnp
import numpy as np
from jax import lax
from jax.experimental import pallas as pl
from jax.experimental.pallas import tpu as pltpu


def _detection_loss_kernel(out_ref, tgt_ref, part_ref):
    # out_ref / tgt_ref: (TB, C, N) in native dtype; widen once in-kernel.
    out = out_ref[...].astype(jnp.float32)
    tgt = tgt_ref[...].astype(jnp.float32)
    TB, C, N = out.shape

    # ----------------- BCE on objectness (unnormalized sum) ----------------
    # PyTorch BCELoss clamps each log term at -100.  (Inputs outside (0, 1)
    # produce NaN, exactly like the PyTorch module would misbehave.)
    p = out[:, 0, :]                                      # (TB, N)
    t = tgt[:, 0, :]                                      # (TB, N)
    log_p = jnp.maximum(jnp.log(p), -100.0)
    log_1mp = jnp.maximum(jnp.log(1.0 - p), -100.0)
    bce_sum = jnp.sum(-(t * log_p + (1.0 - t) * log_1mp))

    # ----------- filtered_output / sorted_target (the triple loop) ---------
    presence = t != 0.0                                   # (TB, N)
    cls_idx = tgt[:, 4, :].astype(jnp.int32)              # (TB, N), trunc = .long()

    # filtered_output: zero every box with no object present.
    filt = jnp.where(presence[:, None, :], out, 0.0)      # (TB, C, N)

    # sorted_target row c <- target box j*, the LAST j with presence and
    # class == c (last-writer-wins, matching the python loop order).
    # One (N, N) iota (class row index) + one lane iota (box index j).
    cc = lax.broadcasted_iota(jnp.int32, (N, N), 0)       # cc[c, j] = c
    jj = lax.broadcasted_iota(jnp.int32, (1, 1, N), 2)    # lane index j
    match = jnp.logical_and(presence[:, None, :],
                            cls_idx[:, None, :] == cc[None, :, :])   # (TB, N, N)
    best_j = jnp.max(jnp.where(match, jj, -1), axis=-1)   # (TB, N), -1 = no object
    one_hot = (best_j[:, :, None] == jj).astype(jnp.float32)         # (TB, Nc, Nj)
    # NOTE: class indices outside [0, N) are silently dropped (row stays 0);
    # the PyTorch loop would index out of bounds and raise instead.

    # VPU masked gather of the only sorted_target features we need.
    def sort_feat(f):
        return jnp.sum(one_hot * tgt[:, f, :][:, None, :], axis=-1)  # (TB, N)

    st_x = sort_feat(1)
    st_y = sort_feat(2)
    st_wh = sort_feat(3)
    y_cls = sort_feat(4).astype(jnp.int32)                # (TB, N) CE targets

    # ------------------------ CrossEntropy (sum) ---------------------------
    # logits[b, k, n] = filtered_output[b, n, 4 + k]; class dim = lanes (n).
    logits = filt[:, 4:, :]                               # (TB, K, N), K == N
    m = jnp.max(logits, axis=-1)                          # (TB, K)
    lse = m + jnp.log(jnp.sum(jnp.exp(logits - m[:, :, None]), axis=-1))
    pick_mask = y_cls[:, :, None] == jj                   # (TB, K, N)
    picked = jnp.sum(jnp.where(pick_mask, logits, 0.0), axis=-1)     # (TB, K)
    ce_sum = jnp.sum(lse - picked)

    # ------------------------------ MSE sums -------------------------------
    lx_sum = jnp.sum((filt[:, 1, :] - st_x) ** 2)
    ly_sum = jnp.sum((filt[:, 2, :] - st_y) ** 2)
    lwh_sum = jnp.sum((jnp.sqrt(filt[:, 3, :]) - jnp.sqrt(st_wh)) ** 2)

    # -------------- per-tile partial sums (finalized outside) --------------
    lane8 = lax.broadcasted_iota(jnp.int32, (1, 1, 8), 2)
    part_ref[...] = (
        (lane8 == 0).astype(jnp.float32) * bce_sum
        + (lane8 == 1).astype(jnp.float32) * ce_sum
        + (lane8 == 2).astype(jnp.float32) * lx_sum
        + (lane8 == 3).astype(jnp.float32) * ly_sum
        + (lane8 == 4).astype(jnp.float32) * lwh_sum
    )


def detection_loss(output, target, *, block_b=None):
    """Pallas TPU implementation of DetectionLoss.forward(output, target)."""
    B, N, C = output.shape
    assert output.shape == target.shape
    # PyTorch's CE on (B, N, C-4) logits with a (B, N) index target is only
    # shape-valid when C - 4 == N (dim 1 is the class dimension).
    assert C - 4 == N, "CrossEntropyLoss shape validity requires C - 4 == N"

    # Lane-dense layout: boxes (N) on lanes, features (C) on sublanes.
    # (No dtype cast here: DMA the arrays in their native dtype.)
    out_t = jnp.transpose(output, (0, 2, 1))              # (B, C, N)
    tgt_t = jnp.transpose(target, (0, 2, 1))              # (B, C, N)

    itemsize = output.dtype.itemsize

    def tile_bytes(tb):
        # 2 inputs x 2 pipeline buffers + ~(TB, N, N) mask/one-hot intermediates.
        return 2 * 2 * tb * C * N * itemsize + 8 * tb * N * N * 4

    if block_b is None:
        # Largest batch-tile that keeps the working set small on every
        # generation (v7x has only 64 MiB physical / 32 MiB scoped VMEM).
        budget = 8 * 1024 * 1024
        block_b = 1
        for tb in range(1, B + 1):
            if B % tb == 0 and tile_bytes(tb) <= budget:
                block_b = tb
    assert B % block_b == 0
    gb = B // block_b

    vmem_limit = int(min(max(2 * tile_bytes(block_b) + (1 << 20), 4 << 20),
                         48 << 20))

    partials = pl.pallas_call(
        _detection_loss_kernel,
        out_shape=jax.ShapeDtypeStruct((gb, 1, 8), jnp.float32),
        grid=(gb,),
        in_specs=[
            pl.BlockSpec((block_b, C, N), lambda b: (b, 0, 0)),
            pl.BlockSpec((block_b, C, N), lambda b: (b, 0, 0)),
        ],
        out_specs=pl.BlockSpec((1, 1, 8), lambda b: (b, 0, 0)),
        compiler_params=pltpu.CompilerParams(
            dimension_semantics=("parallel",),
            vmem_limit_bytes=vmem_limit,
        ),
    )(out_t, tgt_t)

    # Finalize: reduce the per-tile partial sums, normalize once, apply weights.
    sums = jnp.sum(partials[:, 0, :], axis=0)              # (8,)
    inv_n = 1.0 / float(B * N)                             # B*N == B*K
    bce = sums[0] * inv_n
    ce = sums[1] * inv_n
    mse = (sums[2] + sums[3] + 2.0 * sums[4]) * inv_n
    return 10.0 * mse + bce + 0.5 * (1.0 - bce) + ce


def detection_loss_ref(output, target):
    """Pure-JAX reference replicating the PyTorch forward semantics."""
    out = output.astype(jnp.float32)
    tgt = target.astype(jnp.float32)
    B, N, C = out.shape
    p = out[:, :, 0]
    t = tgt[:, :, 0]
    bce = jnp.mean(
        -(t * jnp.maximum(jnp.log(p), -100.0)
          + (1.0 - t) * jnp.maximum(jnp.log(1.0 - p), -100.0))
    )
    presence = t != 0.0
    cls = tgt[:, :, 4].astype(jnp.int32)
    filt = jnp.where(presence[:, :, None], out, 0.0)
    jidx = jnp.arange(N)
    match = presence[:, :, None] & (cls[:, :, None] == jidx[None, None, :])
    best_j = jnp.max(jnp.where(match, jidx[None, :, None], -1), axis=1)     # (B, N)
    gathered = jnp.take_along_axis(tgt, jnp.maximum(best_j, 0)[:, :, None], axis=1)
    sorted_tgt = jnp.where((best_j >= 0)[:, :, None], gathered, 0.0)
    logits = filt[:, :, 4:]
    y = sorted_tgt[:, :, 4].astype(jnp.int32)
    lse = jax.scipy.special.logsumexp(logits, axis=1)                        # (B, K)
    picked = jnp.take_along_axis(logits, y[:, None, :], axis=1)[:, 0, :]
    ce = jnp.mean(lse - picked)
    lx = jnp.mean((filt[:, :, 1] - sorted_tgt[:, :, 1]) ** 2)
    ly = jnp.mean((filt[:, :, 2] - sorted_tgt[:, :, 2]) ** 2)
    lwh = jnp.mean((jnp.sqrt(filt[:, :, 3]) - jnp.sqrt(sorted_tgt[:, :, 3])) ** 2)
    mse = lx + ly + 2.0 * lwh
    return 10.0 * mse + bce + 0.5 * (1.0 - bce) + ce


if __name__ == "__main__":
    B, N = 2, 8
    C = N + 4  # 12 features per box; C-4 == N so the CE shapes are valid

    key = jax.random.PRNGKey(0)
    k1, k2, k3, k4, k5 = jax.random.split(key, 5)

    presence = (jax.random.uniform(k1, (B, N)) > 0.4).astype(jnp.float32)
    boxes = jax.random.uniform(k2, (B, N, 3), minval=0.05, maxval=0.95)   # x, y, wh
    cls = jax.random.randint(k3, (B, N), 0, N).astype(jnp.float32)
    extra = jax.random.uniform(k4, (B, N, C - 5))
    target = jnp.concatenate(
        [presence[:, :, None], boxes, cls[:, :, None], extra], axis=-1
    ).astype(jnp.float32)                                                  # (B, N, C)
    # predictions in (0, 1) so BCE logs and the sqrt in Lwh are well defined
    output = jax.nn.sigmoid(jax.random.normal(k5, (B, N, C))).astype(jnp.float32)

    # f32 inputs, explicitly tiled over the batch (grid=(2,), 'parallel').
    loss = jax.block_until_ready(detection_loss(output, target, block_b=1))
    ref = jax.block_until_ready(detection_loss_ref(output, target))
    np.testing.assert_allclose(np.asarray(loss), np.asarray(ref), rtol=1e-4, atol=1e-5)

    # bf16 input path: native-dtype DMA (half the HBM bytes), in-kernel widen.
    out_bf16 = output.astype(jnp.bfloat16)
    tgt_bf16 = target.astype(jnp.bfloat16)
    loss_bf16 = jax.block_until_ready(detection_loss(out_bf16, tgt_bf16))
    ref_bf16 = jax.block_until_ready(detection_loss_ref(out_bf16, tgt_bf16))
    np.testing.assert_allclose(np.asarray(loss_bf16), np.asarray(ref_bf16),
                               rtol=1e-3, atol=1e-3)
    print("KERNEL_OK")
</pallas_src>

<mosaic_0001>
module attributes {stable_mosaic.version = 11 : i64} {
  func.func @_detection_loss_kernel(%arg0: i32, %arg1: memref<1x12x8xf32, #tpu.memory_space<vmem>>, %arg2: memref<1x12x8xf32, #tpu.memory_space<vmem>>, %arg3: memref<1x1x8xf32, #tpu.memory_space<vmem>>) attributes {dimension_semantics = [#tpu.dimension_semantics<parallel>], iteration_bounds = array<i64: 2>, scalar_prefetch = 0 : i64, scratch_operands = 0 : i64, tpu.core_type = #tpu.core_type<tc>, window_params = [{transform_indices = @transform_0, window_bounds = array<i64: 1, 12, 8>}, {transform_indices = @transform_1, window_bounds = array<i64: 1, 12, 8>}, {transform_indices = @transform_2, window_bounds = array<i64: 1, 1, 8>}]} {
    %c0 = arith.constant 0 : index
    %c0_0 = arith.constant 0 : index
    %c0_1 = arith.constant 0 : index
    %0 = vector.load %arg1[%c0, %c0_0, %c0_1] : memref<1x12x8xf32, #tpu.memory_space<vmem>>, vector<1x12x8xf32>
    %c0_2 = arith.constant 0 : index
    %c0_3 = arith.constant 0 : index
    %c0_4 = arith.constant 0 : index
    %1 = vector.load %arg2[%c0_2, %c0_3, %c0_4] : memref<1x12x8xf32, #tpu.memory_space<vmem>>, vector<1x12x8xf32>
    %2 = vector.extract_strided_slice %0 {offsets = [0, 0, 0], sizes = [1, 1, 8], strides = [1, 1, 1]} : vector<1x12x8xf32> to vector<1x1x8xf32>
    %3 = vector.shape_cast %2 : vector<1x1x8xf32> to vector<1x8xf32>
    %4 = vector.extract_strided_slice %1 {offsets = [0, 0, 0], sizes = [1, 1, 8], strides = [1, 1, 1]} : vector<1x12x8xf32> to vector<1x1x8xf32>
    %5 = vector.shape_cast %4 : vector<1x1x8xf32> to vector<1x8xf32>
    %6 = math.log %3 : vector<1x8xf32>
    %cst = arith.constant -1.000000e+02 : f32
    %7 = vector.broadcast %cst : f32 to vector<1x8xf32>
    %8 = arith.maximumf %6, %7 : vector<1x8xf32>
    %cst_5 = arith.constant 1.000000e+00 : f32
    %9 = vector.broadcast %cst_5 : f32 to vector<1x8xf32>
    %10 = arith.subf %9, %3 : vector<1x8xf32>
    %11 = math.log %10 : vector<1x8xf32>
    %cst_6 = arith.constant -1.000000e+02 : f32
    %12 = vector.broadcast %cst_6 : f32 to vector<1x8xf32>
    %13 = arith.maximumf %11, %12 : vector<1x8xf32>
    %14 = arith.mulf %5, %8 : vector<1x8xf32>
    %cst_7 = arith.constant 1.000000e+00 : f32
    %15 = vector.broadcast %cst_7 : f32 to vector<1x8xf32>
    %16 = arith.subf %15, %5 : vector<1x8xf32>
    %17 = arith.mulf %16, %13 : vector<1x8xf32>
    %18 = arith.addf %14, %17 : vector<1x8xf32>
    %cst_8 = arith.constant 0.000000e+00 : f32
    %19 = vector.broadcast %cst_8 : f32 to vector<1x8xf32>
    %20 = arith.subf %19, %18 : vector<1x8xf32>
    %21 = vector.shape_cast %20 : vector<1x8xf32> to vector<1x1x8xf32>
    %cst_9 = arith.constant dense<0.000000e+00> : vector<1xf32>
    %22 = vector.multi_reduction <add>, %21, %cst_9 [1, 2] : vector<1x1x8xf32> to vector<1xf32>
    %23 = vector.shape_cast %22 : vector<1xf32> to vector<1x1x1xf32>
    %24 = vector.extract %23[0, 0, 0] : f32 from vector<1x1x1xf32>
    %cst_10 = arith.constant 0.000000e+00 : f32
    %25 = vector.broadcast %cst_10 : f32 to vector<1x8xf32>
    %26 = arith.cmpf one, %5, %25 : vector<1x8xf32>
    %27 = vector.extract_strided_slice %1 {offsets = [0, 4, 0], sizes = [1, 1, 8], strides = [1, 1, 1]} : vector<1x12x8xf32> to vector<1x1x8xf32>
    %28 = vector.shape_cast %27 : vector<1x1x8xf32> to vector<1x8xf32>
    %29 = arith.fptosi %28 : vector<1x8xf32> to vector<1x8xi32>
    %30 = vector.shape_cast %26 : vector<1x8xi1> to vector<1x1x8xi1>
    %cst_11 = arith.constant 0.000000e+00 : f32
    %31 = vector.shape_cast %30 : vector<1x1x8xi1> to vector<1x1x8xi1>
    %32 = vector.broadcast %31 : vector<1x1x8xi1> to vector<1x12x8xi1>
    %33 = vector.broadcast %cst_11 : f32 to vector<1x12x8xf32>
    %34 = arith.select %32, %0, %33 : vector<1x12x8xi1>, vector<1x12x8xf32>
    %35 = tpu.iota {dimensions = array<i32: 0>} : vector<8x8xi32>
    %36 = tpu.iota {dimensions = array<i32: 2>} : vector<1x1x8xi32>
    %37 = vector.shape_cast %26 : vector<1x8xi1> to vector<1x1x8xi1>
    %38 = vector.shape_cast %29 : vector<1x8xi32> to vector<1x1x8xi32>
    %39 = vector.shape_cast %35 : vector<8x8xi32> to vector<1x8x8xi32>
    %40 = vector.broadcast %38 : vector<1x1x8xi32> to vector<1x8x8xi32>
    %41 = arith.cmpi eq, %40, %39 : vector<1x8x8xi32>
    %42 = vector.broadcast %37 : vector<1x1x8xi1> to vector<1x8x8xi1>
    %43 = arith.andi %42, %41 : vector<1x8x8xi1>
    %c-1_i32 = arith.constant -1 : i32
    %44 = vector.shape_cast %36 : vector<1x1x8xi32> to vector<1x1x8xi32>
    %45 = vector.broadcast %44 : vector<1x1x8xi32> to vector<1x8x8xi32>
    %46 = vector.broadcast %c-1_i32 : i32 to vector<1x8x8xi32>
    %47 = arith.select %43, %45, %46 : vector<1x8x8xi1>, vector<1x8x8xi32>
    %cst_12 = arith.constant dense<-2147483648> : vector<1x8xi32>
    %48 = vector.multi_reduction <maxsi>, %47, %cst_12 [2] : vector<1x8x8xi32> to vector<1x8xi32>
    %49 = vector.shape_cast %48 : vector<1x8xi32> to vector<1x8x1xi32>
    %50 = vector.broadcast %49 : vector<1x8x1xi32> to vector<1x8x8xi32>
    %51 = vector.broadcast %36 : vector<1x1x8xi32> to vector<1x8x8xi32>
    %52 = arith.cmpi eq, %50, %51 : vector<1x8x8xi32>
    %53 = arith.extui %52 : vector<1x8x8xi1> to vector<1x8x8xi32>
    %54 = arith.sitofp %53 : vector<1x8x8xi32> to vector<1x8x8xf32>
    %55 = vector.extract_strided_slice %1 {offsets = [0, 1, 0], sizes = [1, 1, 8], strides = [1, 1, 1]} : vector<1x12x8xf32> to vector<1x1x8xf32>
    %56 = vector.shape_cast %55 : vector<1x1x8xf32> to vector<1x8xf32>
    %57 = vector.shape_cast %56 : vector<1x8xf32> to vector<1x1x8xf32>
    %58 = vector.broadcast %57 : vector<1x1x8xf32> to vector<1x8x8xf32>
    %59 = arith.mulf %54, %58 : vector<1x8x8xf32>
    %cst_13 = arith.constant dense<0.000000e+00> : vector<1x8xf32>
    %60 = vector.multi_reduction <add>, %59, %cst_13 [2] : vector<1x8x8xf32> to vector<1x8xf32>
    %61 = vector.extract_strided_slice %1 {offsets = [0, 2, 0], sizes = [1, 1, 8], strides = [1, 1, 1]} : vector<1x12x8xf32> to vector<1x1x8xf32>
    %62 = vector.shape_cast %61 : vector<1x1x8xf32> to vector<1x8xf32>
    %63 = vector.shape_cast %62 : vector<1x8xf32> to vector<1x1x8xf32>
    %64 = vector.broadcast %63 : vector<1x1x8xf32> to vector<1x8x8xf32>
    %65 = arith.mulf %54, %64 : vector<1x8x8xf32>
    %cst_14 = arith.constant dense<0.000000e+00> : vector<1x8xf32>
    %66 = vector.multi_reduction <add>, %65, %cst_14 [2] : vector<1x8x8xf32> to vector<1x8xf32>
    %67 = vector.extract_strided_slice %1 {offsets = [0, 3, 0], sizes = [1, 1, 8], strides = [1, 1, 1]} : vector<1x12x8xf32> to vector<1x1x8xf32>
    %68 = vector.shape_cast %67 : vector<1x1x8xf32> to vector<1x8xf32>
    %69 = vector.shape_cast %68 : vector<1x8xf32> to vector<1x1x8xf32>
    %70 = vector.broadcast %69 : vector<1x1x8xf32> to vector<1x8x8xf32>
    %71 = arith.mulf %54, %70 : vector<1x8x8xf32>
    %cst_15 = arith.constant dense<0.000000e+00> : vector<1x8xf32>
    %72 = vector.multi_reduction <add>, %71, %cst_15 [2] : vector<1x8x8xf32> to vector<1x8xf32>
    %73 = vector.extract_strided_slice %1 {offsets = [0, 4, 0], sizes = [1, 1, 8], strides = [1, 1, 1]} : vector<1x12x8xf32> to vector<1x1x8xf32>
    %74 = vector.shape_cast %73 : vector<1x1x8xf32> to vector<1x8xf32>
    %75 = vector.shape_cast %74 : vector<1x8xf32> to vector<1x1x8xf32>
    %76 = vector.broadcast %75 : vector<1x1x8xf32> to vector<1x8x8xf32>
    %77 = arith.mulf %54, %76 : vector<1x8x8xf32>
    %cst_16 = arith.constant dense<0.000000e+00> : vector<1x8xf32>
    %78 = vector.multi_reduction <add>, %77, %cst_16 [2] : vector<1x8x8xf32> to vector<1x8xf32>
    %79 = arith.fptosi %78 : vector<1x8xf32> to vector<1x8xi32>
    %80 = vector.extract_strided_slice %34 {offsets = [0, 4, 0], sizes = [1, 8, 8], strides = [1, 1, 1]} : vector<1x12x8xf32> to vector<1x8x8xf32>
    %cst_17 = arith.constant dense<0xFF800000> : vector<1x8xf32>
    %81 = vector.multi_reduction <maximumf>, %80, %cst_17 [2] : vector<1x8x8xf32> to vector<1x8xf32>
    %82 = vector.shape_cast %81 : vector<1x8xf32> to vector<1x8x1xf32>
    %83 = vector.broadcast %82 : vector<1x8x1xf32> to vector<1x8x8xf32>
    %84 = arith.subf %80, %83 : vector<1x8x8xf32>
    %85 = math.exp %84 : vector<1x8x8xf32>
    %cst_18 = arith.constant dense<0.000000e+00> : vector<1x8xf32>
    %86 = vector.multi_reduction <add>, %85, %cst_18 [2] : vector<1x8x8xf32> to vector<1x8xf32>
    %87 = math.log %86 : vector<1x8xf32>
    %88 = arith.addf %81, %87 : vector<1x8xf32>
    %89 = vector.shape_cast %79 : vector<1x8xi32> to vector<1x8x1xi32>
    %90 = vector.broadcast %89 : vector<1x8x1xi32> to vector<1x8x8xi32>
    %91 = vector.broadcast %36 : vector<1x1x8xi32> to vector<1x8x8xi32>
    %92 = arith.cmpi eq, %90, %91 : vector<1x8x8xi32>
    %cst_19 = arith.constant 0.000000e+00 : f32
    %93 = vector.broadcast %cst_19 : f32 to vector<1x8x8xf32>
    %94 = arith.select %92, %80, %93 : vector<1x8x8xi1>, vector<1x8x8xf32>
    %cst_20 = arith.constant dense<0.000000e+00> : vector<1x8xf32>
    %95 = vector.multi_reduction <add>, %94, %cst_20 [2] : vector<1x8x8xf32> to vector<1x8xf32>
    %96 = arith.subf %88, %95 : vector<1x8xf32>
    %97 = vector.shape_cast %96 : vector<1x8xf32> to vector<1x1x8xf32>
    %cst_21 = arith.constant dense<0.000000e+00> : vector<1xf32>
    %98 = vector.multi_reduction <add>, %97, %cst_21 [1, 2] : vector<1x1x8xf32> to vector<1xf32>
    %99 = vector.shape_cast %98 : vector<1xf32> to vector<1x1x1xf32>
    %100 = vector.extract %99[0, 0, 0] : f32 from vector<1x1x1xf32>
    %101 = vector.extract_strided_slice %34 {offsets = [0, 1, 0], sizes = [1, 1, 8], strides = [1, 1, 1]} : vector<1x12x8xf32> to vector<1x1x8xf32>
    %102 = vector.shape_cast %101 : vector<1x1x8xf32> to vector<1x8xf32>
    %103 = arith.subf %102, %60 : vector<1x8xf32>
    %104 = arith.mulf %103, %103 : vector<1x8xf32>
    %105 = vector.shape_cast %104 : vector<1x8xf32> to vector<1x1x8xf32>
    %cst_22 = arith.constant dense<0.000000e+00> : vector<1xf32>
    %106 = vector.multi_reduction <add>, %105, %cst_22 [1, 2] : vector<1x1x8xf32> to vector<1xf32>
    %107 = vector.shape_cast %106 : vector<1xf32> to vector<1x1x1xf32>
    %108 = vector.extract %107[0, 0, 0] : f32 from vector<1x1x1xf32>
    %109 = vector.extract_strided_slice %34 {offsets = [0, 2, 0], sizes = [1, 1, 8], strides = [1, 1, 1]} : vector<1x12x8xf32> to vector<1x1x8xf32>
    %110 = vector.shape_cast %109 : vector<1x1x8xf32> to vector<1x8xf32>
    %111 = arith.subf %110, %66 : vector<1x8xf32>
    %112 = arith.mulf %111, %111 : vector<1x8xf32>
    %113 = vector.shape_cast %112 : vector<1x8xf32> to vector<1x1x8xf32>
    %cst_23 = arith.constant dense<0.000000e+00> : vector<1xf32>
    %114 = vector.multi_reduction <add>, %113, %cst_23 [1, 2] : vector<1x1x8xf32> to vector<1xf32>
    %115 = vector.shape_cast %114 : vector<1xf32> to vector<1x1x1xf32>
    %116 = vector.extract %115[0, 0, 0] : f32 from vector<1x1x1xf32>
    %117 = vector.extract_strided_slice %34 {offsets = [0, 3, 0], sizes = [1, 1, 8], strides = [1, 1, 1]} : vector<1x12x8xf32> to vector<1x1x8xf32>
    %118 = vector.shape_cast %117 : vector<1x1x8xf32> to vector<1x8xf32>
    %119 = math.sqrt %118 : vector<1x8xf32>
    %120 = math.sqrt %72 : vector<1x8xf32>
    %121 = arith.subf %119, %120 : vector<1x8xf32>
    %122 = arith.mulf %121, %121 : vector<1x8xf32>
    %123 = vector.shape_cast %122 : vector<1x8xf32> to vector<1x1x8xf32>
    %cst_24 = arith.constant dense<0.000000e+00> : vector<1xf32>
    %124 = vector.multi_reduction <add>, %123, %cst_24 [1, 2] : vector<1x1x8xf32> to vector<1xf32>
    %125 = vector.shape_cast %124 : vector<1xf32> to vector<1x1x1xf32>
    %126 = vector.extract %125[0, 0, 0] : f32 from vector<1x1x1xf32>
    %127 = tpu.iota {dimensions = array<i32: 2>} : vector<1x1x8xi32>
    %c0_i32 = arith.constant 0 : i32
    %128 = vector.broadcast %c0_i32 : i32 to vector<1x1x8xi32>
    %129 = arith.cmpi eq, %127, %128 : vector<1x1x8xi32>
    %130 = arith.extui %129 : vector<1x1x8xi1> to vector<1x1x8xi32>
    %131 = arith.sitofp %130 : vector<1x1x8xi32> to vector<1x1x8xf32>
    %132 = vector.broadcast %24 : f32 to vector<1x1x8xf32>
    %133 = arith.mulf %131, %132 : vector<1x1x8xf32>
    %c1_i32 = arith.constant 1 : i32
    %134 = vector.broadcast %c1_i32 : i32 to vector<1x1x8xi32>
    %135 = arith.cmpi eq, %127, %134 : vector<1x1x8xi32>
    %136 = arith.extui %135 : vector<1x1x8xi1> to vector<1x1x8xi32>
    %137 = arith.sitofp %136 : vector<1x1x8xi32> to vector<1x1x8xf32>
    %138 = vector.broadcast %100 : f32 to vector<1x1x8xf32>
    %139 = arith.mulf %137, %138 : vector<1x1x8xf32>
    %140 = arith.addf %133, %139 : vector<1x1x8xf32>
    %c2_i32 = arith.constant 2 : i32
    %141 = vector.broadcast %c2_i32 : i32 to vector<1x1x8xi32>
    %142 = arith.cmpi eq, %127, %141 : vector<1x1x8xi32>
    %143 = arith.extui %142 : vector<1x1x8xi1> to vector<1x1x8xi32>
    %144 = arith.sitofp %143 : vector<1x1x8xi32> to vector<1x1x8xf32>
    %145 = vector.broadcast %108 : f32 to vector<1x1x8xf32>
    %146 = arith.mulf %144, %145 : vector<1x1x8xf32>
    %147 = arith.addf %140, %146 : vector<1x1x8xf32>
    %c3_i32 = arith.constant 3 : i32
    %148 = vector.broadcast %c3_i32 : i32 to vector<1x1x8xi32>
    %149 = arith.cmpi eq, %127, %148 : vector<1x1x8xi32>
    %150 = arith.extui %149 : vector<1x1x8xi1> to vector<1x1x8xi32>
    %151 = arith.sitofp %150 : vector<1x1x8xi32> to vector<1x1x8xf32>
    %152 = vector.broadcast %116 : f32 to vector<1x1x8xf32>
    %153 = arith.mulf %151, %152 : vector<1x1x8xf32>
    %154 = arith.addf %147, %153 : vector<1x1x8xf32>
    %c4_i32 = arith.constant 4 : i32
    %155 = vector.broadcast %c4_i32 : i32 to vector<1x1x8xi32>
    %156 = arith.cmpi eq, %127, %155 : vector<1x1x8xi32>
    %157 = arith.extui %156 : vector<1x1x8xi1> to vector<1x1x8xi32>
    %158 = arith.sitofp %157 : vector<1x1x8xi32> to vector<1x1x8xf32>
    %159 = vector.broadcast %126 : f32 to vector<1x1x8xf32>
    %160 = arith.mulf %158, %159 : vector<1x1x8xf32>
    %161 = arith.addf %154, %160 : vector<1x1x8xf32>
    %c0_25 = arith.constant 0 : index
    %c0_26 = arith.constant 0 : index
    %c0_27 = arith.constant 0 : index
    %162 = vector.load %arg3[%c0_25, %c0_26, %c0_27] : memref<1x1x8xf32, #tpu.memory_space<vmem>>, vector<1x1x8xf32>
    tpu.vector_store %arg3[%c0_25, %c0_26, %c0_27], %161 {strides = array<i32>} : memref<1x1x8xf32, #tpu.memory_space<vmem>>, vector<1x1x8xf32>,
    return
  }
  func.func @transform_0(%arg0: i32) -> (i32, i32, i32) {
    %c0_i32 = arith.constant 0 : i32
    %c0_i32_0 = arith.constant 0 : i32
    %c0_i32_1 = arith.constant 0 : i32
    return %arg0, %c0_i32, %c0_i32_0 : i32, i32, i32
  }
  func.func @transform_1(%arg0: i32) -> (i32, i32, i32) {
    %c0_i32 = arith.constant 0 : i32
    %c0_i32_0 = arith.constant 0 : i32
    %c0_i32_1 = arith.constant 0 : i32
    return %arg0, %c0_i32, %c0_i32_0 : i32, i32, i32
  }
  func.func @transform_2(%arg0: i32) -> (i32, i32, i32) {
    %c0_i32 = arith.constant 0 : i32
    %c0_i32_0 = arith.constant 0 : i32
    %c0_i32_1 = arith.constant 0 : i32
    return %arg0, %c0_i32, %c0_i32_0 : i32, i32, i32
  }
}

</mosaic_0001>

<bundles_post_ra>
// kernel: tpu_custom_call.1
= control target key start
LH: loop header
LB: loop body
LE: loop exit
PB: predicated region body
PF: predicated region fallthrough
CT: control target
= control target key end

     0   :  { %7 = vsyncpa [#allocation3], 0  ;;  %s876_s0 = inlined_call_operand.vmem [shape: f32[2,12,8], index: 0, kind: input, shape index: {}]   ;;  %s877_s1 = inlined_call_operand.vmem [shape: f32[2,12,8], index: 1, kind: input, shape index: {}]   ;;  %s878_s2 = inlined_call_operand.hbm [shape: f32[2,1,8], index: 2, kind: output, shape index: {}]  }
   0x1   :  { %9 = vsyncpa [#allocation3 + $0x1], 0  ;;  %s695_s9 = smov 0   ;;  %s697_s10 = smov 0  }
   0x2   :  { %s699_s11 = smov 0   ;;  %s701_s12 = smov 0  }
   0x3 LB: > { %s716_s13 = sadd.s32 4294967295, %s675_s12   ;;  %s521_s14 = sadd.s32 4294967294, %s675_s12   ;;  %s675_s12 = sphi %s701_s12, %s884_s12   ;;  %s671_s11 = sphi %s699_s11, %s883_s11   ;;  %s667_s10 = sphi %s697_s10, %s882_s10   ;;  %s663_s9 = sphi %s695_s9, %s881_s9  }
   0x4   : > { %s720_s15 = sadd.s32 1, %s675_s12   ;;  %s74_s16 = sadd.s32 1, %s671_s11 }
   0x5   : > { %s71_s17 = ssub.s32 %s675_s12, %s720_s15  ;;  %p84_p0 = scmp.ne.s32.totalorder %s671_s11, %s667_s10 }
   0x6   : > { %p72_p1 = scmp.eq.s32.totalorder %s71_s17, 0  ;;  %p85_p2 = scmp.eq.s32.totalorder %s716_s13, 1 }
   0x7   : > { %p90_p3 = scmp.ne.s32.totalorder %s667_s10, %s663_s9  ;;  %p91_p4 = scmp.eq.s32.totalorder %s521_s14, 1 }
   0x8   : > { %s731_s18 = scalar_select %p72_p1, %s671_s11, %s74_s16  }
   0x9   : > { %p733_p5 = por %p85_p2, %p84_p0  ;;  %p737_p6 = por %p91_p4, %p90_p3 }
   0xa   : > { %p524_p7 = scmp.ge.s32.totalorder %s675_s12, 1  ;;  %p125_p8 = scmp.lt.s32.totalorder %s675_s12, 3 }
   0xc   : > { %p126_p9 = pnand %p524_p7, %p125_p8 }
   0xd   : > { %p151_p10 = scmp.lt.s32.totalorder (!%p126_p9), %s716_s13, 1  ;;  %v190_v0 = vlaneseq (!%p126_p9)  ;;  %v677_v1 = vmov (!%p126_p9), 0   ;;  %vm260_vm1 = vcmask (!%p126_p9), 64516   ;;  %vm208_vm4 = vcmask (!%p126_p9), 64512   ;;  %s149_s4 = sand.u32 (!%p126_p9), 1, %s667_s10  }
   0xe   : > { %129 = sbr.rel (%p126_p9) target bundleno = 991 (0x3df), region = 28  ;;  %596 = vset.pattern.permute.xlu0 (!%p126_p9), %v677_v1  ;;  %595 = vset.pattern.permute.xlu1 (!%p126_p9), %v677_v1  ;;  %vm264_vm6 = vcmask (!%p126_p9), 60416   ;;  %v678_v41 = vmov (!%p126_p9), 0.0   ;;  %vm289_vm9 = vcmask (!%p126_p9), 1043456   ;;  %vm176_vm15 = vcmask (!%p126_p9), 57344   ;;  %s535_s7 = sshll.u32 (!%p126_p9), %s716_s13, 4 }
   0xf   : > { %v745_v2 = vshrl.u32 (!%p126_p9), %v190_v0, 7  ;;  %v761_v11 = vand.u32 (!%p126_p9), 127, %v190_v0  ;;  %s150_s8 = scalar_lea.vmem (!%p126_p9), [#allocation2], %s149_s4 }
  0x10   : > { %s454_s14 = sshll.u32 (!%p126_p9), %s150_s8, 4  ;;  %s835_s14 = int_to_ptr.vmem [resolvable:$true] %s454_s14 }
  0x11   : > { %v192_v3 = vsub.s32 (!%p126_p9), 0, %v745_v2  ;;  %v203_v6 = vsub.s32 (!%p126_p9), 4, %v745_v2  ;;  %v245_v40 = vsub.s32 (!%p126_p9), 3, %v745_v2  ;;  %v237_v47 = vsub.s32 (!%p126_p9), 2, %v745_v2  ;;  %s613_s23 = scalar_lea.vmem (!%p126_p9), %s835_s14, 16 }
  0x12   : > { %v229_v56 = vsub.s32 (!%p126_p9), 1, %v745_v2  ;;  %p614_p11 = scmp.ne.s32.totalorder (!%p126_p9), %s835_s14, %s613_s23 }
  0x14   : > { %p615_p12 = pnand (!%p126_p9), %p614_p11, %p733_p5 }
  0x15   : > { %s152_s21 = scalar_select %p151_p10, %s716_s13, 1 }
  0x16   : > { %p616_p13 = pneg %p615_p12  ;;  %s679_s13 = smov [#allocation2]  }
  0x17   : > { %s538_s22 = sshll.u32 %s152_s21, 4  ;;  %s833_s21 = scalar_lea.hbm %s878_s2, %s535_s7 }
  0x18   : > { %s160_s25 = scalar_lea.vmem %s877_s1, %s538_s22  ;;  %s155_s28 = scalar_lea.vmem %s876_s0, %s538_s22 }
  0x19   : > { %v751_v4 = vld [vmem:[%s160_s25] sm:$0xff]  ;;  %v162_v19 = vld [vmem:[%s155_s28 + $0x8] sm:$0xf]  ;;  %s442_s22 = scalar_lea.sflag [#allocation3], %s149_s4  ;;  %s617_s24 = sshll.u32 %s679_s13, 4  ;;  %s618_s24 = int_to_ptr.vmem [resolvable:$false] %s617_s24 }
  0x1a   : > { %vm187_vm0 = vcmp.ne.f32.partialorder %v751_v4, 0.0  ;;  %v542_v5 = vtrunc.f32 %v751_v4  ;;  %v759_v10 = vld [vmem:[%s155_s28] sm:$0xff]  ;;  %v254_v39 = vrot.slane %v751_v4, %v203_v6  ;;  %v246_v46 = vrot.slane %v751_v4, %v245_v40  ;;  %s619_s25 = scalar_lea.vmem %s618_s24, 32  ;;  %p620_p0 = scmp.lt.s32.totalorder %s835_s14, %s618_s24 }
  0x1b   : > { %v189_v7 = vsel %vm187_vm0, 1, %v677_v1  ;;  %v238_v50 = vrot.slane %v751_v4, %v237_v47  ;;  %v230_v61 = vrot.slane %v751_v4, %v229_v56  ;;  %vm321_vm0 = vcmask 97312   ;;  %p621_p1 = scmp.lt.s32.totalorder %s619_s25, %s613_s23 }
  0x1c   : > { %v543_v8 = vcvt.f32.s32 %v542_v5  ;;  %v193_v9 = vrot.slane %v189_v7, %v192_v3 }
  0x1d   : > { %p622_p2 = por %p621_p1, %p620_p0 }
  0x1e   : > { %vm194_vm2 = vcmp.eq.s32.totalorder %v193_v9, 1  ;;  %v204_v12 = vrot.slane %v543_v8, %v203_v6 }
  0x1f   : > { %v764_v13 = vsel %vm194_vm2, %v759_v10, 0.0  ;;  %v196_v20 = vsel %vm194_vm2, %v162_v19, 0.0  ;;  %p623_p3 = pnand %p622_p2, %p616_p13 }
  0x20   : > { %vm205_vm3 = vcmp.eq.s32.totalorder %v204_v12, %v745_v2  ;;  %v261_v14 = vsel %vm260_vm1, %v764_v13, -inf  ;;  %v265_v21 = vsel %vm264_vm6, %v196_v20, -inf  ;;  %v291_v54 = vrot.slane %v196_v20, 4 }
  0x21   : > { %vm206_vm5 = vmand %vm194_vm2, %vm205_vm3  ;;  %262 = vmax.xlane.f32.xlu1 %v261_v14  ;;  %v290_v55 = vrot.slane %v764_v13, 4  ;;  %vm378_vm12 = vcmp.eq.f32.partialorder %v764_v13, inf  ;;  %vm380_vm14 = vcmp.eq.f32.partialorder %v764_v13, 0.0  ;;  %vm416_vm2 = vcmp.eq.s32.totalorder %v761_v11, 1 }
  0x22   : > { %v207_v15 = vsel %vm206_vm5, %v761_v11, 4294967295  ;;  %vm422_vm3 = vcmp.eq.s32.totalorder %v761_v11, 2  ;;  %vm434_vm5 = vcmp.eq.s32.totalorder %v761_v11, 4 }
  0x23   : > { %v209_v16 = vsel %vm208_vm4, %v207_v15, 2147483648  ;;  %v292_v60 = vsel %vm289_vm9, %v290_v55, %v291_v54 }
  0x24   : > { %v211_v17 = vshra.s32 %v209_v16, 16  ;;  %v210_v23 = vand.u32 65535, %v209_v16 }
  0x25   : > { %266 = vmax.xlane.f32.xlu1 %v265_v21 }
  0x26   : > { %v213_v18 = vcvt.s32.f32 %v211_v17  ;;  %v212_v26 = vcvt.s32.f32 %v210_v23  ;;  %v167_v17 = vsub.f32 1.0, %v759_v10 }
  0x28   : > { %214 = vmax.xlane.f32.xlu0 %v213_v18 }
  0xae   : > { %v772_v22 = vpop.xlane.xlu1 %262 }
  0xaf   : > { %v268_v24 = vsub.f32 %v764_v13, %v772_v22 }
  0xb1   : > { %v270_v25 = vmul.f32 1.442695, %v268_v24 }
  0xb2   : > { %v267_v31 = vpop.xlane.xlu1 %266 }
  0xb3   : > { %597 = vpow2.f32 %v270_v25  ;;  %v269_v32 = vsub.f32 %v196_v20, %v267_v31 }
  0xb5   : > { %v215_v27 = vpop.xlane.xlu0 %214  ;;  %v272_v33 = vmul.f32 1.442695, %v269_v32 }
  0xb6   : > { %vm216_vm7 = vcmp.eq.f32.partialorder %v213_v18, %v215_v27  ;;  %v221_v34 = vcvt.f32.s32 %v215_v27  ;;  %v172_v27 = vsub.f32 1.0, %v751_v4 }
  0xb7   : > { %v217_v28 = vsel %vm216_vm7, %v212_v26, -inf  ;;  %599 = vpow2.f32 %v272_v33 }
  0xb8   : > { %218 = vmax.xlane.f32.xlu0 %v217_v28  ;;  %v222_v36 = vshll.u32 %v221_v34, 16 }
  0xbd   : > { %v598_v29 = vpop.eup %597 }
  0xbe   : > { %v274_v30 = vsel %vm260_vm1, %v598_v29, 0.0  ;;  %vm411_vm1 = vcmp.eq.s32.totalorder %v761_v11, 0 }
  0xbf   : > { %275 = vadd.xlane.f32.xlu1 %v274_v30 }
  0xc1   : > { %v600_v44 = vpop.eup %599 }
  0xc2   : > { %v277_v48 = vsel %vm264_vm6, %v600_v44, 0.0 }
 0x145   : > { %v219_v35 = vpop.xlane.xlu0 %218 }
 0x146   : > { %v220_v37 = vcvt.f32.s32 %v219_v35 }
 0x148   : > { %v223_v38 = vadd.s32 %v222_v36, %v220_v37 }
 0x14a   : > { %vm224_vm8 = vcmp.eq.s32.totalorder %v223_v38, %v761_v11 }
 0x14b   : > { %v529_v42 = vsel %vm224_vm8, 1.0, %v678_v41 }
 0x14c   : > { %v255_v43 = vmul.f32 %v529_v42, %v254_v39  ;;  %v247_v49 = vmul.f32 %v529_v42, %v246_v46  ;;  %v239_v52 = vmul.f32 %v529_v42, %v238_v50  ;;  %v231_v0 = vmul.f32 %v529_v42, %v230_v61  ;;  %v276_v3 = vpop.xlane.xlu1 %275 }
 0x14d   : > { %601 = vlog2.f32 %v276_v3 }
 0x14e   : > { %v256_v45 = vsel %vm208_vm4, %v255_v43, 0.0  ;;  %v248_v51 = vsel %vm208_vm4, %v247_v49, 0.0  ;;  %v240_v53 = vsel %vm208_vm4, %v239_v52, 0.0  ;;  %v232_v1 = vsel %vm208_vm4, %v231_v0, 0.0 }
 0x14f   : > { %257 = vadd.xlane.f32.xlu0 %v256_v45  ;;  %v381_v43 = vand.u32 2147483648, %v764_v13 }
 0x153   : > { %278 = vadd.xlane.f32.xlu0 %v277_v48 }
 0x157   : > { %249 = vadd.xlane.f32.xlu0 %v248_v51  ;;  %v602_v6 = vpop.eup %601 }
 0x158   : > { %v281_v8 = vmul.f32 0.6931472, %v602_v6 }
 0x15a   : > { %v284_v14 = vadd.f32 %v281_v8, %v772_v22 }
 0x15b   : > { %241 = vadd.xlane.f32.xlu0 %v240_v53 }
 0x1dc   : > { %v258_v57 = vpop.xlane.xlu0 %257 }
 0x1dd   : > { %v544_v58 = vtrunc.f32 %v258_v57 }
 0x1df   : > { %v545_v59 = vcvt.f32.s32 %v544_v58 }
 0x1e0   : > { %v279_v5 = vpop.xlane.xlu0 %278 }
 0x1e1   : > { %vm286_vm10 = vcmp.eq.s32.totalorder %v545_v59, %v761_v11  ;;  %603 = vlog2.f32 %v279_v5  ;;  %v316_v59 = vadd.s32 4294967292, %v761_v11 }
 0x1e2   : > { %v294_v62 = vsel %vm286_vm10, %v292_v60, 0.0  ;;  %605 = vlog2.f32 %v759_v10  ;;  %v337_v10 = vsub.s32 %v761_v11, %v745_v2  ;;  %v311_v60 = vadd.s32 4, %v761_v11 }
 0x1e3   : > { %v295_v63 = vsel %vm208_vm4, %v294_v62, 0.0  ;;  %607 = vlog2.f32 %v167_v17  ;;  %v319_v61 = vsub.s32 %v316_v59, %v745_v2  ;;  %vm428_vm4 = vcmp.eq.s32.totalorder %v761_v11, 3 }
 0x1e4   : > { %296 = vadd.xlane.f32.xlu1 %v295_v63  ;;  %v250_v20 = vpop.xlane.xlu0 %249  ;;  %v314_v62 = vsub.s32 %v311_v60, %v745_v2 }
 0x1e5   : > { %609 = vrsqrt.f32 %v250_v20  ;;  %vm385_vm11 = vcmp.eq.f32.partialorder %v250_v20, inf  ;;  %v388_v39 = vand.u32 2147483648, %v250_v20  ;;  %vm387_vm13 = vcmp.eq.f32.partialorder %v250_v20, 0.0 }
 0x1e6   : > { %611 = vrsqrt.f32 %v764_v13 }
 0x1e8   : > { %233 = vadd.xlane.f32.xlu1 %v232_v1  ;;  %v242_v35 = vpop.xlane.xlu0 %241 }
 0x1e9   : > { %v359_v40 = vrot.slane %v242_v35, %v337_v10 }
 0x1eb   : > { %v604_v7 = vpop.eup %603  ;;  %v361_v46 = vsub.f32 %v764_v13, %v359_v40 }
 0x1ec   : > { %v283_v9 = vmul.f32 0.6931472, %v604_v7  ;;  %v606_v21 = vpop.eup %605 }
 0x1ed   : > { %v608_v23 = vpop.eup %607  ;;  %v165_v24 = vmul.f32 0.6931472, %v606_v21  ;;  %v362_v52 = vmul.f32 %v361_v46, %v361_v46 }
 0x1ee   : > { %v285_v15 = vadd.f32 %v283_v9, %v267_v31  ;;  %v169_v25 = vmul.f32 0.6931472, %v608_v23 }
 0x1ef   : > { %v166_v22 = vmax.f32 %v165_v24, -100.0  ;;  %v610_v28 = vpop.eup %609  ;;  %v364_v55 = vrot.slane %v362_v52, 2 }
 0x1f0   : > { %v170_v26 = vmax.f32 %v169_v25, -100.0  ;;  %v384_v30 = vmul.f32 %v610_v28, %v250_v20  ;;  %v612_v33 = vpop.eup %611 }
 0x1f1   : > { %v171_v31 = vmul.f32 %v166_v22, %v751_v4  ;;  %v377_v37 = vmul.f32 %v612_v33, %v764_v13  ;;  %v366_v57 = vsel %vm176_vm15, %v364_v55, 0.0  ;;  %v534_v55 = vsel %vm434_vm5, 1.0, %v678_v41 }
 0x1f2   : > { %v173_v32 = vmul.f32 %v172_v27, %v170_v26  ;;  %v386_v38 = vsel %vm385_vm11, %v250_v20, %v384_v30 }
 0x1f3   : > { %v389_v44 = vsel %vm387_vm13, %v388_v39, %v386_v38  ;;  %v379_v45 = vsel %vm378_vm12, %v764_v13, %v377_v37 }
 0x1f4   : > { %v174_v36 = vadd.f32 %v173_v32, %v171_v31  ;;  %v394_v48 = vrot.slane %v389_v44, %v337_v10  ;;  %v382_v49 = vsel %vm380_vm14, %v381_v43, %v379_v45  ;;  %v530_v44 = vsel %vm411_vm1, 1.0, %v678_v41 }
 0x1f5   : > { %v531_v45 = vsel %vm416_vm2, 1.0, %v678_v41 }
 0x1f6   : > { %v175_v4 = vsub.f32 0.0, %v174_v36  ;;  %v396_v53 = vsub.f32 %v382_v49, %v394_v48 }
 0x1f8   : > { %v177_v50 = vsel %vm176_vm15, %v175_v4, 0.0  ;;  %v397_v56 = vmul.f32 %v396_v53, %v396_v53 }
 0x1fa   : > { %v399_v58 = vrot.slane %v397_v56, 3 }
 0x271   : > { %v297_v12 = vpop.xlane.xlu1 %296 }
 0x272   : > { %v299_v16 = vrot.slane %v297_v12, 4 }
 0x274   : > { %v301_v18 = vsub.f32 %v284_v14, %v299_v16  ;;  %v302_v19 = vsub.f32 %v285_v15, %v299_v16 }
 0x275   : > { %v234_v29 = vpop.xlane.xlu1 %233 }
 0x276   : > { %309 = vperm.xlu0 %596, %v302_v19   ;;  %306 = vperm.xlu1 %595, %v301_v18   ;;  %v338_v34 = vrot.slane %v234_v29, %v337_v10 }
 0x278   : > { %v340_v42 = vsub.f32 %v764_v13, %v338_v34  ;;  %v401_v13 = vsel %vm176_vm15, %v399_v58, 0.0 }
 0x27a   : > { %v341_v47 = vmul.f32 %v340_v42, %v340_v42 }
 0x27c   : > { %v343_v51 = vrot.slane %v341_v47, 1  ;;  %v532_v47 = vsel %vm422_vm3, 1.0, %v678_v41 }
 0x27e   : > { %v345_v54 = vsel %vm176_vm15, %v343_v51, 0.0  ;;  %v533_v51 = vsel %vm428_vm4, 1.0, %v678_v41 }
 0x29a   : > { %178 = vadd.xlane.f32.xlu1 %v177_v50 }
 0x29e   : > { %346 = vadd.xlane.f32.xlu1 %v345_v54 }
 0x2a2   : > { %367 = vadd.xlane.f32.xlu1 %v366_v57 }
 0x2a6   : > { %402 = vadd.xlane.f32.xlu1 %v401_v13 }
 0x2f5   : > { %v310_v63 = vpop.permute.xlu0 %309  ;;  %v307_v0 = vpop.permute.xlu1 %306 }
 0x2f6   : > { %v320_v1 = vrot.slane %v310_v63, %v319_v61  ;;  %v315_v3 = vrot.slane %v307_v0, %v314_v62 }
 0x2f8   : > { %v322_v5 = vsel %vm321_vm0, %v320_v1, %v315_v3 }
 0x2f9   : > { %v324_v6 = vsel %vm176_vm15, %v322_v5, 0.0 }
 0x2fa   : > { %325 = vadd.xlane.f32.xlu0 %v324_v6 }
 0x327   : > { %v179_v7 = vpop.xlane.xlu1 %178 }
 0x328   : > { %v180_v8 = vrot.slane %v179_v7, 4 }
 0x32a   : > { %v181_v9 = vadd.f32 %v180_v8, %v179_v7 }
 0x32b   : > { %v347_v17 = vpop.xlane.xlu1 %346 }
 0x32c   : > { %v182_v12 = vrot.slane %v181_v9, 2  ;;  %v348_v19 = vrot.slane %v347_v17, 4 }
 0x32e   : > { %v183_v14 = vadd.f32 %v182_v12, %v181_v9  ;;  %v349_v23 = vadd.f32 %v348_v19, %v347_v17 }
 0x32f   : > { %v368_v18 = vpop.xlane.xlu1 %367 }
 0x330   : > { %v184_v15 = vrot.slane %v183_v14, 1  ;;  %v369_v20 = vrot.slane %v368_v18, 4  ;;  %v350_v22 = vrot.slane %v349_v23, 2 }
 0x332   : > { %v185_v16 = vadd.f32 %v184_v15, %v183_v14  ;;  %v370_v24 = vadd.f32 %v369_v20, %v368_v18  ;;  %v351_v10 = vadd.f32 %v350_v22, %v349_v23 }
 0x333   : > { %v403_v2 = vpop.xlane.xlu1 %402 }
 0x334   : > { %540 = vpush %v185_v16  ;;  %v404_v21 = vrot.slane %v403_v2, 4  ;;  %v371_v27 = vrot.slane %v370_v24, 2  ;;  %v352_v35 = vrot.slane %v351_v10, 1 }
 0x336   : > { %v405_v25 = vadd.f32 %v404_v21, %v403_v2  ;;  %v372_v32 = vadd.f32 %v371_v27, %v370_v24  ;;  %v353_v40 = vadd.f32 %v352_v35, %v351_v10 }
 0x338   : > { %v406_v29 = vrot.slane %v405_v25, 2  ;;  %v373_v37 = vrot.slane %v372_v32, 1 }
 0x33a   : > { %v407_v33 = vadd.f32 %v406_v29, %v405_v25  ;;  %v374_v42 = vadd.f32 %v373_v37, %v372_v32 }
 0x33c   : > { %v408_v38 = vrot.slane %v407_v33, 1 }
 0x33e   : > { %v409_v43 = vadd.f32 %v408_v38, %v407_v33 }
 0x365   : > { %s541_s29 = spop %540 }
 0x366   : > { %v414_v4 = vstv %s541_s29 }
 0x367   : > { %v415_v48 = vmul.f32 %v530_v44, %v414_v4 }
 0x387   : > { %v326_v26 = vpop.xlane.xlu0 %325 }
 0x388   : > { %v327_v28 = vrot.slane %v326_v26, 4 }
 0x38a   : > { %v328_v30 = vadd.f32 %v327_v28, %v326_v26 }
 0x38c   : > { %v329_v31 = vrot.slane %v328_v30, 2 }
 0x38e   : > { %v330_v34 = vadd.f32 %v329_v31, %v328_v30 }
 0x390   : > { %v331_v36 = vrot.slane %v330_v34, 1 }
 0x392   : > { %v332_v39 = vadd.f32 %v331_v36, %v330_v34 }
 0x394   : > { %546 = vpush %v332_v39 }
 0x395   : > { %548 = vpush %v353_v40 }
 0x396   : > { %550 = vpush %v374_v42 }
 0x397   : > { %552 = vpush %v409_v43 }
 0x3c5   : > { %s547_s30 = spop %546 }
 0x3c6   : > { %v419_v46 = vstv %s547_s30  ;;  %s549_s3 = spop %548 }
 0x3c7   : > { %v420_v49 = vmul.f32 %v531_v45, %v419_v46  ;;  %v425_v50 = vstv %s549_s3  ;;  %s551_s5 = spop %550 }
 0x3c8   : > { %v431_v52 = vstv %s551_s5  ;;  %s553_s6 = spop %552  ;;  %v426_v54 = vmul.f32 %v532_v47, %v425_v50 }
 0x3c9   : > { %v421_v53 = vadd.f32 %v420_v49, %v415_v48  ;;  %v437_v56 = vstv %s553_s6  ;;  %v432_v58 = vmul.f32 %v533_v51, %v431_v52 }
 0x3ca   : > { %v438_v59 = vmul.f32 %v534_v55, %v437_v56 }
 0x3cb   : > { %v427_v57 = vadd.f32 %v426_v54, %v421_v53 }
 0x3cd   : > { %v433_v13 = vadd.f32 %v432_v58, %v427_v57 }
 0x3cf   : > { %v439_v60 = vadd.f32 %v438_v59, %v433_v13 }
 0x3d1   : > { %440 = vst.msk [vmem:[%s150_s8] sm:$0x1] %vm176_vm15, %v439_v60 }
 0x3d2   : > { %626 = shalt.err (!%p623_p3)
}
 0x3d3   : > { %s627_s26 = scalar_lea.hbm %s833_s21, 16  ;;  %s631_s29 = scalar_lea.hbm %s878_s2, 32 }
 0x3d4   : > { %p628_p4 = scmp.ne.s32.totalorder %s833_s21, %s627_s26  ;;  %p632_p9 = scmp.lt.u32.totalorder %s833_s21, %s878_s2 }
 0x3d5   : > { %p633_p10 = scmp.lt.u32.totalorder %s631_s29, %s627_s26  ;;  %p635_p12 = scmp.lt.u32.totalorder %s627_s26, %s833_s21 }
 0x3d6   : > { %p629_p7 = pnand %p628_p4, %p733_p5 }
 0x3d7   : > { %p634_p11 = por %p633_p10, %p632_p9 }
 0x3d8   : > { %p630_p8 = pneg %p629_p7 }
 0x3d9   : > { %p636_p13 = por %p635_p12, %p634_p11 }
 0x3db   : > { %p637_p0 = pnand %p636_p13, %p630_p8 }
 0x3dd   : > { %640 = shalt.err (!%p637_p0)
}
 0x3de   : > { %554 = dma.vmem_to_hbm [thread:$0]  (%p733_p5), %s835_s14, 16, %s833_s21, %s442_s22  }
 0x3df PF: > { %p560_p1 = scmp.ge.s32.totalorder %s675_s12, 2  ;;  %s466_s4 = sand.u32 1, %s663_s9  }
 0x3e0   : > { %s467_s5 = scalar_lea.sflag [#allocation3], %s466_s4 }
 0x3e1   : > { %p557_p2 = pnand %p560_p1, %p737_p6 }
 0x3e3   : > { %658 = dma.done.wait (!%p557_p2), %s467_s5, 16  }
 0x3e4   : > { %660 = vsyncadd (!%p557_p2), %s467_s5, 4294967280  ;;  %p12_p3 = scmp.ge.s32.totalorder %s720_s15, 4   ;;  %s881_s9 = smov %s667_s10 }
 0x3e5   : > { %s882_s10 = smov %s671_s11  ;;  %s883_s11 = smov %s731_s18 }
 0x3e6   : > { %s884_s12 = smov %s720_s15  ;;  %14 = sbr.rel (!%p12_p3) target bundleno = 3 (0x3), region = 66 }
 0x3ed   :  { %471 = vsyncpa [#allocation3], 1 }
 0x3ee   :  { %473 = vsyncpa [#allocation3 + $0x1], 1 }

</bundles_post_ra>
